<compile_context>
chip_gen: v7x
topology: tpu7x:2x2x1
jax: 0.10.0
libtpu: 0.0.40
codegen_flags: <defaults>
</compile_context>

<pallas_src>
import functools

import jax
import jax.numpy as jnp
from jax.experimental import pallas as pl
from jax.experimental.pallas import tpu as pltpu


# ----------------------------------------------------------------------------
# Pallas kernel: one batch element per grid step.  No VMEM scratch needed.
# ----------------------------------------------------------------------------
def _dynconv_kernel(x_ref, mask_ref, w1_ref, b1_ref, ww_ref, bw_ref,
                    w2_ref, b2_ref, sel_ref, o_ref, *, T, C, H, K):
    pad = (K - 1) // 2
    f32, bf16 = jnp.float32, jnp.bfloat16

    x = x_ref[0]                                                  # (T, C) bf16

    # linear1 (bf16 MXU operands, f32 accumulate) + GLU in f32.
    h = jnp.dot(x, w1_ref[...], preferred_element_type=f32) + b1_ref[...]
    g = h[:, :C] * jax.nn.sigmoid(h[:, C:])                       # (T, C) f32

    # Dynamic per-position tap logits, tap-major columns (j*H + h),
    # lane-padded to a multiple of 128 in the wrapper -> unmasked MXU result.
    w = jnp.dot(g.astype(bf16), ww_ref[...],
                preferred_element_type=f32) + bw_ref[...]         # (T, Np) f32

    # Edge-tap masking: tap j at position t reads source row t + j - pad.
    # Validity depends only on (t, j); build it once as a (T, H) tile per tap.
    t_iota = jax.lax.broadcasted_iota(jnp.int32, (T, H), 0)
    wm = []
    for j in range(K):
        vj = (t_iota >= (pad - j)) & (t_iota < (T + pad - j))
        wm.append(jnp.where(vj, w[:, j * H:(j + 1) * H], -jnp.inf))  # (T, H)

    # Softmax over the K taps for all H heads at once (f32, small tiles).
    m = wm[0]
    for j in range(1, K):
        m = jnp.maximum(m, wm[j])                                 # (T, H)
    e = [jnp.exp(wm[j] - m) for j in range(K)]                    # (T, H) each
    s = e[0]
    for j in range(1, K):
        s = s + e[j]
    inv = pl.reciprocal(s, approx=True)                           # (T, H)

    # Band accumulation at full (T, C) lane width:
    #   out[t, c] = sum_j pn[t, h(c), j] * g[t + j - pad, c]
    # pn (T, H) is broadcast across each head's dh lanes with a 0/1 (H, C)
    # selection matmul (MXU); shifted g slabs via XLU sublane roll.  Rolled
    # wrap-around rows are finite and multiplied by exact-0 weights.
    n_acc = 2 if K > 1 else 1
    accs = [jnp.zeros((T, C), f32) for _ in range(n_acc)]
    for j in range(K):
        pn_j = e[j] * inv                                         # (T, H)
        wmap = jnp.dot(pn_j.astype(bf16), sel_ref[...],
                       preferred_element_type=f32)                # (T, C)
        if j == pad:
            gsh = g
        else:
            gsh = pltpu.roll(g, shift=(pad - j) % T, axis=0)      # g[t+j-pad]
        accs[j % n_acc] = accs[j % n_acc] + wmap * gsh
    y = accs[0]
    for a in accs[1:]:
        y = y + a                                                 # (T, C) f32

    # Zero masked timesteps (mask01 is 1.0 where mask != 0), then linear2.
    y = y * mask_ref[0]                                           # (T, C)*(T, 1)
    out = jnp.dot(y.astype(bf16), w2_ref[...],
                  preferred_element_type=f32) + b2_ref[...]
    o_ref[0] = out.astype(o_ref.dtype)


# ----------------------------------------------------------------------------
# Wrapper (parameter prep + BlockSpecs)
# ----------------------------------------------------------------------------
def dynamic_convolution(query, mask, params, *, wshare, kernel_size):
    B, T, C = query.shape
    H, K = wshare, kernel_size
    assert C % H == 0
    dh = C // H
    Np = ((H * K + 127) // 128) * 128          # lane-dense padded feature count

    bf16, f32 = jnp.bfloat16, jnp.float32

    w1t = params["w1"].T.astype(bf16)                         # (C, 2C)
    b1r = params["b1"].reshape(1, 2 * C).astype(f32)

    # linear_weight: reorder output features to tap-major (new col = j*H + h)
    # and zero-pad H*K up to Np (zero-cost trace-time data prep).
    perm = jnp.arange(H * K).reshape(H, K).T.reshape(-1)      # p=j*H+h -> h*K+j
    wwt = jnp.zeros((C, Np), bf16).at[:, :H * K].set(
        params["ww"][perm].T.astype(bf16))                    # (C, Np)
    bwr = jnp.zeros((1, Np), f32).at[:, :H * K].set(
        params["bw"][perm].reshape(1, H * K).astype(f32))     # (1, Np)

    w2t = params["w2"].T.astype(bf16)                         # (C, C)
    b2r = params["b2"].reshape(1, C).astype(f32)

    # 0/1 head -> channel selection matrix (broadcast of per-head tap probs
    # across each head's dh lanes, done on the MXU inside the kernel).
    sel = (jnp.arange(C)[None, :] // dh ==
           jnp.arange(H)[:, None]).astype(bf16)               # (H, C)

    x_bf = query.astype(bf16)
    # {0,1} float column mask == (mask.transpose(-1,-2) != 0) in torch terms.
    mask01 = (jnp.transpose(mask, (0, 2, 1)) != 0).astype(f32)   # (B, T, 1)

    kernel = functools.partial(_dynconv_kernel, T=T, C=C, H=H, K=K)

    flops_per_b = (2 * T * C * 2 * C          # linear1
                   + 2 * T * C * Np           # linear_weight
                   + 2 * T * H * C * K        # selection broadcasts
                   + 2 * T * C * K            # band FMAs
                   + 2 * T * C * C)           # linear2
    bytes_per_b = T * C * 2 + T * 4 + T * C * 4
    w_bytes = (C * 2 * C + C * Np + C * C + H * C) * 2 + (2 * C + Np + C) * 4

    return pl.pallas_call(
        kernel,
        out_shape=jax.ShapeDtypeStruct((B, T, C), f32),
        grid=(B,),
        in_specs=[
            pl.BlockSpec((1, T, C), lambda b: (b, 0, 0)),     # query (bf16)
            pl.BlockSpec((1, T, 1), lambda b: (b, 0, 0)),     # mask01 (f32)
            pl.BlockSpec((C, 2 * C), lambda b: (0, 0)),       # W1^T  (bf16)
            pl.BlockSpec((1, 2 * C), lambda b: (0, 0)),       # b1    (f32)
            pl.BlockSpec((C, Np), lambda b: (0, 0)),          # Ww^T tap-major
            pl.BlockSpec((1, Np), lambda b: (0, 0)),          # bw    (f32)
            pl.BlockSpec((C, C), lambda b: (0, 0)),           # W2^T  (bf16)
            pl.BlockSpec((1, C), lambda b: (0, 0)),           # b2    (f32)
            pl.BlockSpec((H, C), lambda b: (0, 0)),           # head 0/1 select
        ],
        out_specs=pl.BlockSpec((1, T, C), lambda b: (b, 0, 0)),
        compiler_params=pltpu.CompilerParams(
            dimension_semantics=("parallel",),                # batch independent
            vmem_limit_bytes=32 * 1024 * 1024),
        cost_estimate=pl.CostEstimate(
            flops=B * flops_per_b,
            transcendentals=B * (T * C + T * H * K),
            bytes_accessed=B * bytes_per_b + w_bytes),
    )(x_bf, mask01, w1t, b1r, wwt, bwr, w2t, b2r, sel)


# ----------------------------------------------------------------------------
# Pure-JAX reference (mirrors the PyTorch forward; same bf16 matmul operands
# as the kernel so the comparison isolates kernel bugs, not dtype rounding).
# ----------------------------------------------------------------------------
def reference(query, mask, p, *, wshare, kernel_size):
    B, T, C = query.shape
    H, K = wshare, kernel_size
    dh = C // H
    pad = (K - 1) // 2
    bf16, f32 = jnp.bfloat16, jnp.float32

    h = jnp.dot(query.astype(bf16), p["w1"].T.astype(bf16),
                preferred_element_type=f32) + p["b1"]
    g = h[..., :C] * jax.nn.sigmoid(h[..., C:])
    w = jnp.dot(g.astype(bf16), p["ww"].T.astype(bf16),
                preferred_element_type=f32) + p["bw"]
    w = w.reshape(B, T, H, K).transpose(0, 2, 1, 3)           # (B,H,T,K)

    t_idx = jnp.arange(T)[:, None]
    s_idx = jnp.arange(T)[None, :]
    j_idx = s_idx - t_idx + pad
    valid = (j_idx >= 0) & (j_idx < K)
    j_c = jnp.clip(j_idx, 0, K - 1)
    t_b = jnp.broadcast_to(t_idx, (T, T))
    scores = jnp.where(valid[None, None], w[:, :, t_b, j_c], -jnp.inf)
    attn = jax.nn.softmax(scores, axis=-1)                    # (B,H,T,T)

    gh = g.reshape(B, T, H, dh).transpose(0, 2, 1, 3)         # (B,H,T,dh)
    out = jnp.einsum("bhts,bhsd->bhtd", attn, gh)
    y = out.transpose(0, 2, 1, 3).reshape(B, T, C)
    y = jnp.where(jnp.transpose(mask, (0, 2, 1)) != 0, y, 0.0)
    return jnp.dot(y.astype(bf16), p["w2"].T.astype(bf16),
                   preferred_element_type=f32) + p["b2"]


# ----------------------------------------------------------------------------
# Deterministic parameter init (shapes per nn.Module __init__)
# ----------------------------------------------------------------------------
def init_params(key, n_feat, wshare, kernel_size):
    C, H, K = n_feat, wshare, kernel_size
    ks = jax.random.split(key, 6)

    def uniform(k, shape, bound):
        return jax.random.uniform(k, shape, jnp.float32, -bound, bound)

    lim1 = 1.0 / (C ** 0.5)
    xav = (6.0 / (C + H * K)) ** 0.5  # xavier_uniform_ for linear_weight.weight
    return {
        "w1": uniform(ks[0], (2 * C, C), lim1),     # linear1.weight
        "b1": uniform(ks[1], (2 * C,), lim1),       # linear1.bias
        "ww": uniform(ks[2], (H * K, C), xav),      # linear_weight.weight
        "bw": uniform(ks[3], (H * K,), lim1),       # linear_weight.bias
        "w2": uniform(ks[4], (C, C), lim1),         # linear2.weight
        "b2": uniform(ks[5], (C,), lim1),           # linear2.bias
    }


if __name__ == "__main__":
    B, T, C = 2, 8, 32
    H, K = 4, 3  # wshare, kernel_size (C % H == 0)

    root = jax.random.PRNGKey(0)
    k_q, k_p = jax.random.split(root)

    query = jax.random.normal(k_q, (B, T, C), jnp.float32)
    # key/value/count are unused by the module's forward; mask is (B, 1, T)
    mask = jnp.ones((B, 1, T), jnp.float32).at[1, 0, -2:].set(0.0)

    params = init_params(k_p, C, H, K)

    out = dynamic_convolution(query, mask, params, wshare=H, kernel_size=K)
    out = jax.block_until_ready(out)

    ref = reference(query, mask, params, wshare=H, kernel_size=K)
    assert out.shape == (B, T, C)
    # Tolerance covers approx-reciprocal softmax normalisation, the bf16
    # selection-matmul broadcast of the tap probabilities, and accumulation
    # order differences (both sides use bf16 matmul operands / f32 accumulate).
    assert jnp.allclose(out, ref, atol=1e-2, rtol=1e-2), "mismatch vs reference"

    print("KERNEL_OK")
</pallas_src>

<mosaic_0001>
module attributes {stable_mosaic.version = 11 : i64} {
  func.func @_dynconv_kernel(%arg0: i32, %arg1: memref<1x8x32xbf16, #tpu.memory_space<vmem>>, %arg2: memref<1x8x1xf32, #tpu.memory_space<vmem>>, %arg3: memref<32x64xbf16, #tpu.memory_space<vmem>>, %arg4: memref<1x64xf32, #tpu.memory_space<vmem>>, %arg5: memref<32x128xbf16, #tpu.memory_space<vmem>>, %arg6: memref<1x128xf32, #tpu.memory_space<vmem>>, %arg7: memref<32x32xbf16, #tpu.memory_space<vmem>>, %arg8: memref<1x32xf32, #tpu.memory_space<vmem>>, %arg9: memref<4x32xbf16, #tpu.memory_space<vmem>>, %arg10: memref<1x8x32xf32, #tpu.memory_space<vmem>>) attributes {dimension_semantics = [#tpu.dimension_semantics<parallel>], iteration_bounds = array<i64: 2>, scalar_prefetch = 0 : i64, scratch_operands = 0 : i64, tpu.core_type = #tpu.core_type<tc>, window_params = [{transform_indices = @transform_0, window_bounds = array<i64: 1, 8, 32>}, {transform_indices = @transform_1, window_bounds = array<i64: 1, 8, 1>}, {pipeline_mode = #tpu.pipeline_mode<synchronous>, transform_indices = @transform_2, window_bounds = array<i64: 32, 64>}, {pipeline_mode = #tpu.pipeline_mode<synchronous>, transform_indices = @transform_3, window_bounds = array<i64: 1, 64>}, {pipeline_mode = #tpu.pipeline_mode<synchronous>, transform_indices = @transform_4, window_bounds = array<i64: 32, 128>}, {pipeline_mode = #tpu.pipeline_mode<synchronous>, transform_indices = @transform_5, window_bounds = array<i64: 1, 128>}, {pipeline_mode = #tpu.pipeline_mode<synchronous>, transform_indices = @transform_6, window_bounds = array<i64: 32, 32>}, {pipeline_mode = #tpu.pipeline_mode<synchronous>, transform_indices = @transform_7, window_bounds = array<i64: 1, 32>}, {pipeline_mode = #tpu.pipeline_mode<synchronous>, transform_indices = @transform_8, window_bounds = array<i64: 4, 32>}, {transform_indices = @transform_9, window_bounds = array<i64: 1, 8, 32>}]} {
    %c0 = arith.constant 0 : index
    %c0_0 = arith.constant 0 : index
    %c0_1 = arith.constant 0 : index
    %0 = vector.load %arg1[%c0, %c0_0, %c0_1] : memref<1x8x32xbf16, #tpu.memory_space<vmem>>, vector<1x8x32xbf16>
    %1 = vector.shape_cast %0 : vector<1x8x32xbf16> to vector<8x32xbf16>
    %c0_2 = arith.constant 0 : index
    %c0_3 = arith.constant 0 : index
    %2 = vector.load %arg3[%c0_2, %c0_3] : memref<32x64xbf16, #tpu.memory_space<vmem>>, vector<32x64xbf16>
    %cst = arith.constant dense<0.000000e+00> : vector<8x64xf32>
    %3 = tpu.matmul %1, %2, %cst {dimension_numbers = #tpu.dot_dimension_numbers<[1], [0], [0], [1], [0, 0, 1, 1], [], []>} : vector<8x32xbf16>, vector<32x64xbf16>, vector<8x64xf32> -> vector<8x64xf32>
    %c0_4 = arith.constant 0 : index
    %c0_5 = arith.constant 0 : index
    %4 = vector.load %arg4[%c0_4, %c0_5] : memref<1x64xf32, #tpu.memory_space<vmem>>, vector<1x64xf32>
    %5 = vector.broadcast %4 : vector<1x64xf32> to vector<8x64xf32>
    %6 = arith.addf %3, %5 : vector<8x64xf32>
    %7 = vector.extract_strided_slice %6 {offsets = [0, 0], sizes = [8, 32], strides = [1, 1]} : vector<8x64xf32> to vector<8x32xf32>
    %8 = vector.extract_strided_slice %6 {offsets = [0, 32], sizes = [8, 32], strides = [1, 1]} : vector<8x64xf32> to vector<8x32xf32>
    %9 = arith.negf %8 : vector<8x32xf32>
    %10 = math.exp %9 : vector<8x32xf32>
    %cst_6 = arith.constant 1.000000e+00 : f32
    %11 = vector.broadcast %cst_6 : f32 to vector<8x32xf32>
    %12 = arith.addf %11, %10 : vector<8x32xf32>
    %13 = arith.divf %11, %12 : vector<8x32xf32>
    %14 = arith.mulf %7, %13 : vector<8x32xf32>
    %15 = arith.truncf %14 : vector<8x32xf32> to vector<8x32xbf16>
    %c0_7 = arith.constant 0 : index
    %c0_8 = arith.constant 0 : index
    %16 = vector.load %arg5[%c0_7, %c0_8] : memref<32x128xbf16, #tpu.memory_space<vmem>>, vector<32x128xbf16>
    %cst_9 = arith.constant dense<0.000000e+00> : vector<8x128xf32>
    %17 = tpu.matmul %15, %16, %cst_9 {dimension_numbers = #tpu.dot_dimension_numbers<[1], [0], [0], [1], [0, 0, 1, 1], [], []>} : vector<8x32xbf16>, vector<32x128xbf16>, vector<8x128xf32> -> vector<8x128xf32>
    %c0_10 = arith.constant 0 : index
    %c0_11 = arith.constant 0 : index
    %18 = vector.load %arg6[%c0_10, %c0_11] : memref<1x128xf32, #tpu.memory_space<vmem>>, vector<1x128xf32>
    %19 = vector.broadcast %18 : vector<1x128xf32> to vector<8x128xf32>
    %20 = arith.addf %17, %19 : vector<8x128xf32>
    %21 = tpu.iota {dimensions = array<i32: 0>} : vector<8x4xi32>
    %c1_i32 = arith.constant 1 : i32
    %22 = vector.broadcast %c1_i32 : i32 to vector<8x4xi32>
    %23 = arith.cmpi sge, %21, %22 : vector<8x4xi32>
    %c9_i32 = arith.constant 9 : i32
    %24 = vector.broadcast %c9_i32 : i32 to vector<8x4xi32>
    %25 = arith.cmpi slt, %21, %24 : vector<8x4xi32>
    %26 = arith.andi %23, %25 : vector<8x4xi1>
    %27 = vector.extract_strided_slice %20 {offsets = [0, 0], sizes = [8, 4], strides = [1, 1]} : vector<8x128xf32> to vector<8x4xf32>
    %cst_12 = arith.constant 0xFF800000 : f32
    %28 = vector.broadcast %cst_12 : f32 to vector<8x4xf32>
    %29 = arith.select %26, %27, %28 : vector<8x4xi1>, vector<8x4xf32>
    %c0_i32 = arith.constant 0 : i32
    %30 = vector.broadcast %c0_i32 : i32 to vector<8x4xi32>
    %31 = arith.cmpi sge, %21, %30 : vector<8x4xi32>
    %c8_i32 = arith.constant 8 : i32
    %32 = vector.broadcast %c8_i32 : i32 to vector<8x4xi32>
    %33 = arith.cmpi slt, %21, %32 : vector<8x4xi32>
    %34 = arith.andi %31, %33 : vector<8x4xi1>
    %35 = vector.extract_strided_slice %20 {offsets = [0, 4], sizes = [8, 4], strides = [1, 1]} : vector<8x128xf32> to vector<8x4xf32>
    %cst_13 = arith.constant 0xFF800000 : f32
    %36 = vector.broadcast %cst_13 : f32 to vector<8x4xf32>
    %37 = arith.select %34, %35, %36 : vector<8x4xi1>, vector<8x4xf32>
    %c-1_i32 = arith.constant -1 : i32
    %38 = vector.broadcast %c-1_i32 : i32 to vector<8x4xi32>
    %39 = arith.cmpi sge, %21, %38 : vector<8x4xi32>
    %c7_i32 = arith.constant 7 : i32
    %40 = vector.broadcast %c7_i32 : i32 to vector<8x4xi32>
    %41 = arith.cmpi slt, %21, %40 : vector<8x4xi32>
    %42 = arith.andi %39, %41 : vector<8x4xi1>
    %43 = vector.extract_strided_slice %20 {offsets = [0, 8], sizes = [8, 4], strides = [1, 1]} : vector<8x128xf32> to vector<8x4xf32>
    %cst_14 = arith.constant 0xFF800000 : f32
    %44 = vector.broadcast %cst_14 : f32 to vector<8x4xf32>
    %45 = arith.select %42, %43, %44 : vector<8x4xi1>, vector<8x4xf32>
    %46 = arith.maximumf %29, %37 : vector<8x4xf32>
    %47 = arith.maximumf %46, %45 : vector<8x4xf32>
    %48 = arith.subf %29, %47 : vector<8x4xf32>
    %49 = math.exp %48 : vector<8x4xf32>
    %50 = arith.subf %37, %47 : vector<8x4xf32>
    %51 = math.exp %50 : vector<8x4xf32>
    %52 = arith.subf %45, %47 : vector<8x4xf32>
    %53 = math.exp %52 : vector<8x4xf32>
    %54 = arith.addf %49, %51 : vector<8x4xf32>
    %55 = arith.addf %54, %53 : vector<8x4xf32>
    %56 = tpu.reciprocal %55 {approx = true} : vector<8x4xf32> -> vector<8x4xf32>
    %cst_15 = arith.constant 0.000000e+00 : f32
    %57 = vector.broadcast %cst_15 : f32 to vector<8x32xf32>
    %cst_16 = arith.constant 0.000000e+00 : f32
    %58 = vector.broadcast %cst_16 : f32 to vector<8x32xf32>
    %59 = arith.mulf %49, %56 : vector<8x4xf32>
    %60 = arith.truncf %59 : vector<8x4xf32> to vector<8x4xbf16>
    %c0_17 = arith.constant 0 : index
    %c0_18 = arith.constant 0 : index
    %61 = vector.load %arg9[%c0_17, %c0_18] : memref<4x32xbf16, #tpu.memory_space<vmem>>, vector<4x32xbf16>
    %cst_19 = arith.constant dense<0.000000e+00> : vector<8x32xf32>
    %62 = tpu.matmul %60, %61, %cst_19 {dimension_numbers = #tpu.dot_dimension_numbers<[1], [0], [0], [1], [0, 0, 1, 1], [], []>} : vector<8x4xbf16>, vector<4x32xbf16>, vector<8x32xf32> -> vector<8x32xf32>
    %c1_i32_20 = arith.constant 1 : i32
    %63 = tpu.dynamic_rotate %14 by %c1_i32_20 dim 0 : vector<8x32xf32>, i32 -> vector<8x32xf32>
    %64 = arith.mulf %62, %63 : vector<8x32xf32>
    %65 = arith.addf %57, %64 : vector<8x32xf32>
    %66 = arith.mulf %51, %56 : vector<8x4xf32>
    %67 = arith.truncf %66 : vector<8x4xf32> to vector<8x4xbf16>
    %c0_21 = arith.constant 0 : index
    %c0_22 = arith.constant 0 : index
    %68 = vector.load %arg9[%c0_21, %c0_22] : memref<4x32xbf16, #tpu.memory_space<vmem>>, vector<4x32xbf16>
    %cst_23 = arith.constant dense<0.000000e+00> : vector<8x32xf32>
    %69 = tpu.matmul %67, %68, %cst_23 {dimension_numbers = #tpu.dot_dimension_numbers<[1], [0], [0], [1], [0, 0, 1, 1], [], []>} : vector<8x4xbf16>, vector<4x32xbf16>, vector<8x32xf32> -> vector<8x32xf32>
    %70 = arith.mulf %69, %14 : vector<8x32xf32>
    %71 = arith.addf %58, %70 : vector<8x32xf32>
    %72 = arith.mulf %53, %56 : vector<8x4xf32>
    %73 = arith.truncf %72 : vector<8x4xf32> to vector<8x4xbf16>
    %c0_24 = arith.constant 0 : index
    %c0_25 = arith.constant 0 : index
    %74 = vector.load %arg9[%c0_24, %c0_25] : memref<4x32xbf16, #tpu.memory_space<vmem>>, vector<4x32xbf16>
    %cst_26 = arith.constant dense<0.000000e+00> : vector<8x32xf32>
    %75 = tpu.matmul %73, %74, %cst_26 {dimension_numbers = #tpu.dot_dimension_numbers<[1], [0], [0], [1], [0, 0, 1, 1], [], []>} : vector<8x4xbf16>, vector<4x32xbf16>, vector<8x32xf32> -> vector<8x32xf32>
    %c7_i32_27 = arith.constant 7 : i32
    %76 = tpu.dynamic_rotate %14 by %c7_i32_27 dim 0 : vector<8x32xf32>, i32 -> vector<8x32xf32>
    %77 = arith.mulf %75, %76 : vector<8x32xf32>
    %78 = arith.addf %65, %77 : vector<8x32xf32>
    %79 = arith.addf %78, %71 : vector<8x32xf32>
    %c0_28 = arith.constant 0 : index
    %c0_29 = arith.constant 0 : index
    %c0_30 = arith.constant 0 : index
    %80 = vector.load %arg2[%c0_28, %c0_29, %c0_30] : memref<1x8x1xf32, #tpu.memory_space<vmem>>, vector<1x8x1xf32>
    %81 = vector.shape_cast %80 : vector<1x8x1xf32> to vector<8x1xf32>
    %82 = vector.broadcast %81 : vector<8x1xf32> to vector<8x32xf32>
    %83 = arith.mulf %79, %82 : vector<8x32xf32>
    %84 = arith.truncf %83 : vector<8x32xf32> to vector<8x32xbf16>
    %c0_31 = arith.constant 0 : index
    %c0_32 = arith.constant 0 : index
    %85 = vector.load %arg7[%c0_31, %c0_32] : memref<32x32xbf16, #tpu.memory_space<vmem>>, vector<32x32xbf16>
    %cst_33 = arith.constant dense<0.000000e+00> : vector<8x32xf32>
    %86 = tpu.matmul %84, %85, %cst_33 {dimension_numbers = #tpu.dot_dimension_numbers<[1], [0], [0], [1], [0, 0, 1, 1], [], []>} : vector<8x32xbf16>, vector<32x32xbf16>, vector<8x32xf32> -> vector<8x32xf32>
    %c0_34 = arith.constant 0 : index
    %c0_35 = arith.constant 0 : index
    %87 = vector.load %arg8[%c0_34, %c0_35] : memref<1x32xf32, #tpu.memory_space<vmem>>, vector<1x32xf32>
    %88 = vector.broadcast %87 : vector<1x32xf32> to vector<8x32xf32>
    %89 = arith.addf %86, %88 : vector<8x32xf32>
    %c0_36 = arith.constant 0 : index
    %c0_37 = arith.constant 0 : index
    %c0_38 = arith.constant 0 : index
    %90 = vector.load %arg10[%c0_36, %c0_37, %c0_38] : memref<1x8x32xf32, #tpu.memory_space<vmem>>, vector<1x8x32xf32>
    %91 = vector.shape_cast %90 : vector<1x8x32xf32> to vector<8x32xf32>
    %92 = vector.shape_cast %89 : vector<8x32xf32> to vector<1x8x32xf32>
    tpu.vector_store %arg10[%c0_36, %c0_37, %c0_38], %92 {strides = array<i32>} : memref<1x8x32xf32, #tpu.memory_space<vmem>>, vector<1x8x32xf32>,
    return
  }
  func.func @transform_0(%arg0: i32) -> (i32, i32, i32) {
    %c0_i32 = arith.constant 0 : i32
    %c0_i32_0 = arith.constant 0 : i32
    %c0_i32_1 = arith.constant 0 : i32
    return %arg0, %c0_i32, %c0_i32_0 : i32, i32, i32
  }
  func.func @transform_1(%arg0: i32) -> (i32, i32, i32) {
    %c0_i32 = arith.constant 0 : i32
    %c0_i32_0 = arith.constant 0 : i32
    %c0_i32_1 = arith.constant 0 : i32
    return %arg0, %c0_i32, %c0_i32_0 : i32, i32, i32
  }
  func.func @transform_2(%arg0: i32) -> (i32, i32) {
    %c0_i32 = arith.constant 0 : i32
    %c0_i32_0 = arith.constant 0 : i32
    %c0_i32_1 = arith.constant 0 : i32
    return %c0_i32, %c0_i32_0 : i32, i32
  }
  func.func @transform_3(%arg0: i32) -> (i32, i32) {
    %c0_i32 = arith.constant 0 : i32
    %c0_i32_0 = arith.constant 0 : i32
    %c0_i32_1 = arith.constant 0 : i32
    return %c0_i32, %c0_i32_0 : i32, i32
  }
  func.func @transform_4(%arg0: i32) -> (i32, i32) {
    %c0_i32 = arith.constant 0 : i32
    %c0_i32_0 = arith.constant 0 : i32
    %c0_i32_1 = arith.constant 0 : i32
    return %c0_i32, %c0_i32_0 : i32, i32
  }
  func.func @transform_5(%arg0: i32) -> (i32, i32) {
    %c0_i32 = arith.constant 0 : i32
    %c0_i32_0 = arith.constant 0 : i32
    %c0_i32_1 = arith.constant 0 : i32
    return %c0_i32, %c0_i32_0 : i32, i32
  }
  func.func @transform_6(%arg0: i32) -> (i32, i32) {
    %c0_i32 = arith.constant 0 : i32
    %c0_i32_0 = arith.constant 0 : i32
    %c0_i32_1 = arith.constant 0 : i32
    return %c0_i32, %c0_i32_0 : i32, i32
  }
  func.func @transform_7(%arg0: i32) -> (i32, i32) {
    %c0_i32 = arith.constant 0 : i32
    %c0_i32_0 = arith.constant 0 : i32
    %c0_i32_1 = arith.constant 0 : i32
    return %c0_i32, %c0_i32_0 : i32, i32
  }
  func.func @transform_8(%arg0: i32) -> (i32, i32) {
    %c0_i32 = arith.constant 0 : i32
    %c0_i32_0 = arith.constant 0 : i32
    %c0_i32_1 = arith.constant 0 : i32
    return %c0_i32, %c0_i32_0 : i32, i32
  }
  func.func @transform_9(%arg0: i32) -> (i32, i32, i32) {
    %c0_i32 = arith.constant 0 : i32
    %c0_i32_0 = arith.constant 0 : i32
    %c0_i32_1 = arith.constant 0 : i32
    return %arg0, %c0_i32, %c0_i32_0 : i32, i32, i32
  }
}

</mosaic_0001>

<bundles_post_ra>
// kernel: tpu_custom_call.1
= control target key start
LH: loop header
LB: loop body
LE: loop exit
PB: predicated region body
PF: predicated region fallthrough
CT: control target
= control target key end

     0   :  { %14 = vsyncpa [#allocation3], 0  ;;  %s1559_s0 = inlined_call_operand.hbm [shape: bf16[2,8,32], index: 0, kind: input, shape index: {}]   ;;  %s1560_s1 = inlined_call_operand.vmem [shape: f32[2,8,1], index: 1, kind: input, shape index: {}]   ;;  %s1561_s2 = inlined_call_operand.vmem [shape: bf16[32,64], index: 2, kind: input, shape index: {}]   ;;  %s1562_s3 = inlined_call_operand.vmem [shape: f32[1,64], index: 3, kind: input, shape index: {}]   ;;  %s1563_s4 = inlined_call_operand.vmem [shape: bf16[32,128], index: 4, kind: input, shape index: {}]   ;;  %s1564_s5 = inlined_call_operand.vmem [shape: f32[1,128], index: 5, kind: input, shape index: {}]   ;;  %s1565_s6 = inlined_call_operand.hbm [shape: bf16[32,32], index: 6, kind: input, shape index: {}]   ;;  %s1566_s7 = inlined_call_operand.vmem [shape: f32[1,32], index: 7, kind: input, shape index: {}]   ;;  %s1567_s8 = inlined_call_operand.vmem [shape: bf16[4,32], index: 8, kind: input, shape index: {}]   ;;  %s1568_s9 = inlined_call_operand.hbm [shape: f32[2,8,32], index: 9, kind: output, shape index: {}]  }
   0x1   :  { %16 = vsyncpa [#allocation3 + $0x1], 0 }
   0x2   :  { %17 = vsyncpa [#allocation6], 0 }
   0x3   :  { %18 = vsyncpa [#allocation4], 0 }
   0x4   :  { %20 = vsyncpa [#allocation4 + $0x1], 0  ;;  %s1290_s30 = smov 0   ;;  %s1292_s10 = smov 0  }
   0x5   :  { %s1294_s11 = smov 0   ;;  %s1296_s12 = smov 0  }
   0x6 LB: > { %s1311_s13 = sadd.s32 4294967295, %s1225_s12   ;;  %s922_s14 = sadd.s32 4294967294, %s1225_s12   ;;  %s1225_s12 = sphi %s1296_s12, %s1591_s12   ;;  %s1221_s11 = sphi %s1294_s11, %s1594_s11   ;;  %s1217_s10 = sphi %s1292_s10, %s1593_s10   ;;  %s1213_s30 = sphi %s1290_s30, %s1592_s30  }
   0x7   : > { %p46_p0 = scmp.ne.s32.totalorder %s1217_s10, %s1213_s30  ;;  %p1569_p1 = scmp.eq.s32.totalorder %s1311_s13, 0 }
   0x8   : > { %p249_p3 = scmp.eq.s32.totalorder %s922_s14, 1  ;;  %p923_p5 = scmp.ge.s32.totalorder %s1225_s12, 1 }
   0x9   : > { %p1320_p4 = por %p1569_p1, %p46_p0  ;;  %p256_p7 = scmp.lt.s32.totalorder %s1225_s12, 3 }
   0xa   : > { %p1325_p6 = por %p249_p3, %p46_p0  ;;  %s1227_s18 = smov [#allocation5]  }
   0xb   : > { %s1575_s15 = scalar_select %p1320_p4, 1, 0 }
   0xc   : > { %s1576_s16 = scalar_select %p1325_p6, 1, 0 }
   0xd   : > { %p1330_p8 = pnand %p923_p5, %p256_p7  ;;  %s280_s19 = sshll.u32 %s1227_s18, 4  ;;  %s1334_s19 = int_to_ptr.vmem [resolvable:$true] %s280_s19 }
   0xe   : > { %1577 = sst [smem:[#allocation11_spill]] %s1576_s16  ;;  %s1346_s21 = sadd.s32 1, %s1225_s12  }
   0xf   : > { %s1578_s17 = scalar_select %p1330_p8, 1, 0 }
  0x10   : > { %p1018_p9 = pneg %p1330_p8  ;;  %1580 = sst [smem:[#allocation12_spill]] %s1346_s21 }
  0x11   : > { %s33_s22 = sadd.s32 1, %s1221_s11  ;;  %s30_s23 = ssub.s32 %s1225_s12, %s1346_s21 }
  0x12   : > { %p1341_p11 = pnand %p1018_p9, %p1569_p1  ;;  %s1097_s26 = scalar_lea.hbm %s1565_s6, 256 }
  0x13   : > { %p1098_p12 = scmp.ne.s32.totalorder %s1565_s6, %s1097_s26  ;;  %p1104_p5 = scmp.lt.u32.totalorder %s1097_s26, %s1565_s6 }
  0x14   : > { %p1099_p13 = pneg %p1341_p11 }
  0x16   : > { %p1100_p0 = pnand %p1099_p13, %p1098_p12 }
  0x18   : > { %p1101_p3 = pneg %p1100_p0 }
  0x1a   : > { %p1106_p7 = pnand %p1104_p5, %p1101_p3 }
  0x1c   : > { %1109 = shalt.err (!%p1106_p7)
}
  0x1d   : > { %s1110_s18 = scalar_lea.vmem %s1334_s19, 256  ;;  %p1118_p2 = scmp.lt.s32.totalorder %s1334_s19, %s1334_s19 }
  0x1e   : > { %p1111_p9 = scmp.ne.s32.totalorder %s1334_s19, %s1110_s18  ;;  %p1119_p6 = scmp.lt.s32.totalorder %s1110_s18, %s1110_s18 }
  0x20   : > { %p1113_p10 = pnand %p1111_p9, %p1099_p13  ;;  %p1120_p4 = por %p1119_p6, %p1118_p2 }
  0x22   : > { %p1114_p1 = pneg %p1113_p10 }
  0x24   : > { %p1121_p8 = pnand %p1120_p4, %p1114_p1 }
  0x26   : > { %1124 = shalt.err (!%p1121_p8)
}
  0x27   : > { %s1228_s24 = smov 64   ;;  %s1229_s25 = smov 4  }
  0x28   : > { %1021 = dma.hbm_to_vmem [thread:$0]  (!%p1341_p11), %s1565_s6, 256, %s1334_s19, [#allocation6], %s1228_s24, %s1228_s24, %s1229_s25  }
  0x29   : > { %p31_p2 = scmp.eq.s32.totalorder %s30_s23, 0  ;;  %p40_p1 = scmp.ne.s32.totalorder %s1221_s11, %s1217_s10 }
  0x2a   : > { %p41_p4 = scmp.eq.s32.totalorder %s1225_s12, 0  ;;  %p1031_p6 = scmp.lt.s32.totalorder %s1225_s12, 2 }
  0x2b   : > { %s1377_s28 = scalar_select %p31_p2, %s1221_s11, %s33_s22  }
  0x2c   : > { %p42_p8 = por %p41_p4, %p40_p1  ;;  %p1581_p10 = scmp.eq.s32.totalorder %s1311_s13, 1 }
  0x2d   : > { %s300_s14 = sand.u32 1, %s1221_s11   ;;  %s927_s18 = sshll.u32 %s1225_s12, 6 }
  0x2e   : > { %p1381_p12 = por %p1581_p10, %p40_p1  ;;  %s926_s21 = sshll.u32 %s300_s14, 2 }
  0x2f   : > { %s1390_s26 = scalar_lea.hbm %s1559_s0, %s927_s18  ;;  %s304_s19 = scalar_lea.vmem [#allocation2], %s926_s21 }
  0x30   : > { %s311_s22 = sshll.u32 %s304_s19, 4  ;;  %p1392_p11 = pnand %p1031_p6, %p42_p8  ;;  %s1396_s22 = int_to_ptr.vmem [resolvable:$true] %s311_s22 }
  0x31   : > { %s301_s24 = scalar_lea.sflag [#allocation3], %s300_s14  ;;  %s1125_s25 = scalar_lea.hbm %s1390_s26, 64 }
  0x32   : > { %p1126_p13 = scmp.ne.s32.totalorder %s1390_s26, %s1125_s25  ;;  %p1127_p0 = pneg %p1392_p11 }
  0x33   : > { %s1130_s27 = scalar_lea.hbm %s1559_s0, 128  ;;  %p1131_p7 = scmp.lt.u32.totalorder %s1390_s26, %s1559_s0 }
  0x34   : > { %p1128_p3 = pnand %p1127_p0, %p1126_p13  ;;  %p1132_p9 = scmp.lt.u32.totalorder %s1130_s27, %s1125_s25 }
  0x35   : > { %p1134_p1 = scmp.lt.u32.totalorder %s1125_s25, %s1390_s26 }
  0x36   : > { %p1129_p5 = pneg %p1128_p3  ;;  %p1133_p2 = por %p1132_p9, %p1131_p7 }
  0x38   : > { %p1135_p4 = por %p1134_p1, %p1133_p2 }
  0x3a   : > { %p1136_p6 = pnand %p1135_p4, %p1129_p5 }
  0x3c   : > { %1139 = shalt.err (!%p1136_p6)
}
  0x3d   : > { %s1140_s14 = scalar_lea.vmem %s1396_s22, 64  ;;  %s1230_s19 = smov [#allocation2]  }
  0x3e   : > { %p1141_p8 = scmp.ne.s32.totalorder %s1396_s22, %s1140_s14  ;;  %s1145_s16 = sshll.u32 %s1230_s19, 4  ;;  %s1146_s16 = int_to_ptr.vmem [resolvable:$false] %s1145_s16 }
  0x3f   : > { %s1147_s21 = scalar_lea.vmem %s1146_s16, 128  ;;  %p1148_p3 = scmp.lt.s32.totalorder %s1396_s22, %s1146_s16 }
  0x40   : > { %p1143_p10 = pnand %p1141_p8, %p1127_p0  ;;  %p1149_p7 = scmp.lt.s32.totalorder %s1147_s21, %s1140_s14 }
  0x42   : > { %p1144_p13 = pneg %p1143_p10  ;;  %p1150_p9 = por %p1149_p7, %p1148_p3 }
  0x44   : > { %p1151_p2 = pnand %p1150_p9, %p1144_p13 }
  0x46   : > { %1154 = shalt.err (!%p1151_p2)
}
  0x47   : > { %1025 = dma.hbm_to_vmem [thread:$0]  (!%p1392_p11), %s1390_s26, 64, %s1396_s22, %s301_s24  }
  0x48   : > { %p1584_p5 = scmp.ne.s32.totalorder %s1578_s17, 0 }
  0x49   : > { %s1426_s25 = sand.u32 (!%p1584_p5), 1, %s1217_s10   ;;  %p1585_p0 = scmp.ne.s32.totalorder (!%p1584_p5), %s1575_s15, 0 }
  0x4a   : > { %327 = sbr.rel (%p1584_p5) target bundleno = 1732 (0x6c4), region = 56  ;;  %s929_s27 = sshll.u32 (!%p1584_p5), %s1426_s25, 2 }
  0x4b   : > { %s330_s18 = scalar_lea.sflag (!%p1584_p5), [#allocation3], %s1426_s25  ;;  %s333_s20 = scalar_lea.vmem (!%p1584_p5), [#allocation2], %s929_s27 }
  0x51   : > { %1200 = dma.done.wait (%p1585_p0), %s330_s18, 64  }
  0x52   : > { %1202 = vsyncadd (%p1585_p0), %s330_s18, 4294967232  ;;  %p1586_p1 = scmp.eq.s32.totalorder %s1311_s13, 0 }
  0x54   : > { %1204 = dma.done.wait (%p1586_p1), [#allocation6], 256   ;;  %p1587_p11 = pmov %p1586_p1 }
  0x55   : > { %v1231_v0 = vmov 0.0   ;;  %vm1232_vm0 = vmmov 0   ;;  %v1079_v1 = vld [vmem:[%s1561_s2] sm:$0xff]   ;;  %v1080_v2 = vld [vmem:[%s1561_s2 + $0x8] sm:$0xff]   ;;  %vm405_vm1 = vcmask 261120   ;;  %s1233_s27 = smov 96   ;;  %v527_v19 = vlaneseq }
  0x56   : > { %1206 = vsyncadd (%p1587_p11), [#allocation6], 4294967040  ;;  %968 = vmatprep.subr.bf16.mxu0 %v1231_v0  ;;  %972 = vmatprep.mubr.msk.bf16.mxu0 %vm1232_vm0, %v1231_v0  ;;  %v381_v3 = vld [vmem:[%s333_s20] sm:$0xf]  ;;  %v1082_v13 = vld [vmem:[%s1563_s4 + $0x8] sm:$0xff]   ;;  %s1234_s15 = smov 124  }
  0x57   : > { %976 = vmatprep.subr.bf16.mxu1 %v1231_v0  ;;  %980 = vmatprep.mubr.msk.bf16.mxu1 %vm1232_vm0, %v1231_v0  ;;  %v1081_v4 = vld [vmem:[%s1563_s4] sm:$0xff]   ;;  %v528_v20 = vshrl.u32 %v527_v19, 7  ;;  %s1235_s17 = smov 120   ;;  %s1236_s26 = smov 8   ;;  %vm585_vm4 = vcmask 1041408   ;;  %vm581_vm5 = vcmask 31744  }
  0x58   : > { %969 = vmatpush3.bf16.msra.mxu0 %v1079_v1  ;;  %977 = vmatpush3.bf16.msra.mxu1 %v1081_v4  ;;  %v933_v5 = vld [vmem:[%s1562_s3] ss:$0 sm:$0xff]  ;;  %s1237_s22 = smov 4   ;;  %p376_p4 = scmp.lt.s32.totalorder %s1311_s13, 1  ;;  %v1238_v53 = vmov 0   ;;  %v1083_v4 = vld [vmem:[#allocation5] sm:$0xff]  }
  0x59   : > { %970 = vmatprep.subr.bf16.mxu0 %v1231_v0  ;;  %978 = vmatprep.subr.bf16.mxu1 %v1231_v0  ;;  %v938_v21 = vld [vmem:[%s1564_s5] ss:$0 sm:$0xff]  ;;  %vm538_vm2 = vcmp.lt.s32.totalorder %v528_v20, 7  ;;  %vm529_vm3 = vcmp.ge.s32.totalorder %v528_v20, 1  ;;  %s931_s18 = sshll.u32 %s1426_s25, 3  ;;  %s1239_s16 = smov [#allocation7]  }
  0x5a   : > { %v580_v42 = vld [vmem:[%s1567_s8] sm:$0x3]  ;;  %1077 = vset.pattern.permute.xlu1 %v1238_v53  ;;  %1078 = vset.pattern.permute.xlu0 %v1238_v53  ;;  %s377_s14 = scalar_select %p376_p4, %s1311_s13, 1 }
  0x5b   : > { %v587_v43 = vsel %vm585_vm4, %v580_v42, 0  ;;  %s1159_s21 = sshll.u32 %s1239_s16, 4  ;;  %s1160_s21 = int_to_ptr.vmem [resolvable:$false] %s1159_s21 }
  0x5c   : > { %971 = vmatpush3.bf16.msra.mxu0 %v1080_v2  ;;  %979 = vmatpush3.bf16.msra.mxu1 %v1082_v13  ;;  %s932_s19 = sshll.u32 %s377_s14, 3 }
  0x5d   : > { %984 = vmatprep.subr.bf16.mxu0 %v1231_v0  ;;  %990 = vmatprep.subr.bf16.mxu1 %v1231_v0 }
  0x5f   : > { %973 = vmatmul.mubr.msk.bf16.vlgmr.msra.gmra.mrb[0].mxu0 %vm405_vm1, %v381_v3 }
  0x60   : > { %986 = vmatprep.mubr.msk.bf16.mxu0 %vm1232_vm0, %v1231_v0  ;;  %985 = vmatpush3.bf16.msra.mxu0 %v587_v43 }
  0x61   : > { %996 = vmatprep.subr.bf16.mxu0 %v1231_v0 }
 0x132   : > { %v443_v6 = vpop.f32.mrb[0].mxu0 }
 0x133   : > { %v444_v7 = vadd.f32 %v933_v5, %v443_v6  ;;  %v974_v8 = vpop.f32.mrb[1].mxu0  ;;  %v1084_v5 = vld [vmem:[#allocation5 + $0x8] sm:$0xff]  }
 0x134   : > { %v446_v9 = vpop.f32.mrb[2].mxu0 }
 0x135   : > { %v937_v10 = vmul.f32 -1.442695, %v444_v7  ;;  %v975_v11 = vpop.f32.mrb[3].mxu0 }
 0x137   : > { %1085 = vpow2.f32 %v937_v10 }
 0x141   : > { %v1086_v12 = vpop.eup %1085 }
 0x142   : > { %v452_v14 = vadd.f32 1.0, %v1086_v12 }
 0x144   : > { %1087 = vrcp.f32 %v452_v14 }
 0x14e   : > { %v1088_v15 = vpop.eup %1087 }
 0x14f   : > { %456 = vrot.lane.b32.xlu0 %v1088_v15, %s1233_s27  ;;  %s379_s27 = scalar_lea.vmem %s1560_s1, %s932_s19 }
 0x150   : > { %v741_v60 = vld [vmem:[%s379_s27] sm:$0xff]  ;;  %s1161_s27 = scalar_lea.vmem %s1160_s21, 256 }
 0x1c1   : > { %v457_v16 = vpop.permute.xlu0 %456 }
 0x1c2   : > { %v1466_v17 = vmul.f32 %v457_v16, %v444_v7 }
 0x1c4   : > { %v460_v18 = vpack.c.bf16 %v1466_v17, %v1466_v17  ;;  %v629_v6 = vrot.slane %v1466_v17, 7  ;;  %v737_v7 = vrot.slane %v1466_v17, 1 }
 0x1c6   : > { %981 = vmatmul.mubr.msk.bf16.vlgmr.msra.gmra.mrb[0].mxu1 %vm405_vm1, %v460_v18 }
 0x1c7   : > { %992 = vmatprep.mubr.msk.bf16.mxu1 %vm1232_vm0, %v1231_v0  ;;  %991 = vmatpush3.bf16.msra.mxu1 %v587_v43 }
 0x1c8   : > { %1002 = vmatprep.subr.bf16.mxu1 %v1231_v0 }
 0x299   : > { %v521_v22 = vpop.f32.mrb[0].mxu1 }
 0x29a   : > { %v522_v23 = vadd.f32 %v938_v21, %v521_v22  ;;  %v982_v24 = vpop.f32.mrb[1].mxu1 }
 0x29b   : > { %v524_v25 = vpop.f32.mrb[2].mxu1  ;;  %v945_v24 = vld [vmem:[%s1566_s7] ss:$0 sm:$0xff] }
 0x29c   : > { %542 = vrot.lane.b32.xlu0 %v522_v23, %s1234_s15  ;;  %v983_v26 = vpop.f32.mrb[3].mxu1  ;;  %v540_v27 = vsel %vm538_vm2, %v522_v23, -inf  ;;  %v532_v29 = vsel %vm529_vm3, %v522_v23, -inf }
 0x29d   : > { %547 = vrot.lane.b32.xlu1 %v540_v27, %s1235_s17 }
 0x30e   : > { %v543_v28 = vpop.permute.xlu0 %542 }
 0x30f   : > { %v545_v30 = vmax.f32 %v532_v29, %v543_v28  ;;  %v548_v31 = vpop.permute.xlu1 %547 }
 0x311   : > { %v550_v32 = vmax.f32 %v545_v30, %v548_v31 }
 0x313   : > { %v551_v33 = vsub.f32 %v532_v29, %v550_v32  ;;  %561 = vrot.lane.b32.xlu0 %v550_v32, %s1236_s26  ;;  %555 = vrot.lane.b32.xlu1 %v550_v32, %s1237_s22 }
 0x315   : > { %v552_v44 = vmul.f32 1.442695, %v551_v33 }
 0x385   : > { %v562_v34 = vpop.permute.xlu0 %561  ;;  %v556_v35 = vpop.permute.xlu1 %555 }
 0x386   : > { %v564_v36 = vsub.f32 %v540_v27, %v562_v34  ;;  %v558_v37 = vsub.f32 %v522_v23, %v556_v35 }
 0x388   : > { %v565_v38 = vmul.f32 1.442695, %v564_v36  ;;  %v559_v39 = vmul.f32 1.442695, %v558_v37 }
 0x38a   : > { %1089 = vpow2.f32 %v565_v38 }
 0x38b   : > { %1091 = vpow2.f32 %v559_v39 }
 0x38c   : > { %1093 = vpow2.f32 %v552_v44 }
 0x394   : > { %v1090_v40 = vpop.eup %1089 }
 0x395   : > { %v1092_v41 = vpop.eup %1091  ;;  %573 = vrot.lane.b32.xlu0 %v1090_v40, %s1235_s17 }
 0x396   : > { %568 = vrot.lane.b32.xlu1 %v1092_v41, %s1234_s15  ;;  %v1094_v45 = vpop.eup %1093 }
 0x407   : > { %v574_v48 = vpop.permute.xlu0 %573 }
 0x408   : > { %v569_v46 = vpop.permute.xlu1 %568 }
 0x409   : > { %v571_v47 = vadd.f32 %v1094_v45, %v569_v46 }
 0x40b   : > { %v576_v49 = vadd.f32 %v574_v48, %v571_v47 }
 0x40d   : > { %1095 = vrcp.f32 %v576_v49 }
 0x417   : > { %v1096_v50 = vpop.eup %1095 }
 0x418   : > { %633 = vrot.lane.b32.xlu0 %v1096_v50, %s1237_s22  ;;  %686 = vrot.lane.b32.xlu1 %v1096_v50, %s1236_s26  ;;  %v578_v51 = vmul.f32 %v1096_v50, %v1094_v45  ;;  %s375_s26 = scalar_lea.vmem [#allocation7], %s931_s18 }
 0x419   : > { %s830_s22 = sshll.u32 %s375_s26, 4  ;;  %s1516_s22 = int_to_ptr.vmem [resolvable:$true] %s830_s22 }
 0x41a   : > { %v579_v52 = vpack.c.bf16 %v578_v51, %v578_v51  ;;  %s1155_s19 = scalar_lea.vmem %s1516_s22, 128  ;;  %p1162_p13 = scmp.lt.s32.totalorder %s1516_s22, %s1160_s21 }
 0x41b   : > { %p1156_p6 = scmp.ne.s32.totalorder %s1516_s22, %s1155_s19  ;;  %p1163_p3 = scmp.lt.s32.totalorder %s1161_s27, %s1155_s19 }
 0x41c   : > { %987 = vmatmul.mubr.msk.bf16.vlgmr.msra.gmra.mrb[4].mxu0 %vm581_vm5, %v579_v52 }
 0x41d   : > { %997 = vmatpush3.bf16.msra.mxu0 %v587_v43  ;;  %998 = vmatprep.mubr.msk.bf16.mxu0 %vm1232_vm0, %v1231_v0  ;;  %p1157_p8 = pnand %p1156_p6, %p1381_p12  ;;  %p1164_p7 = por %p1163_p3, %p1162_p13 }
 0x41f   : > { %p1158_p10 = pneg %p1157_p8 }
 0x421   : > { %p1165_p9 = pnand %p1164_p7, %p1158_p10 }
 0x48a   : > { %v634_v54 = vpop.permute.xlu0 %633  ;;  %v687_v55 = vpop.permute.xlu1 %686 }
 0x48b   : > { %v636_v56 = vmul.f32 %v1092_v41, %v634_v54  ;;  %v689_v57 = vmul.f32 %v1090_v40, %v687_v55 }
 0x48d   : > { %v637_v58 = vpack.c.bf16 %v636_v56, %v636_v56  ;;  %v690_v59 = vpack.c.bf16 %v689_v57, %v689_v57 }
 0x48f   : > { %639 = vrot.lane.b32.xlu0 %v637_v58, %s1234_s15  ;;  %692 = vrot.lane.b32.xlu1 %v690_v59, %s1235_s17  ;;  %s950_s17 = sshll.u32 %s1311_s13, 7  ;;  %s817_s13 = scalar_lea.sflag [#allocation4], %s1426_s25 }
 0x490   : > { %s1514_s14 = scalar_lea.hbm %s1568_s9, %s950_s17 }
 0x493   : > { %744 = vperm.xlu1 %1077, %v741_v60  }
 0x4ef   : > { %v623_v61 = vpop.f32.mrb[4].mxu0 }
 0x4f0   : > { %v988_v62 = vpop.f32.mrb[5].mxu0  ;;  %v630_v10 = vmul.f32 %v629_v6, %v623_v61 }
 0x4f1   : > { %v626_v63 = vpop.f32.mrb[6].mxu0 }
 0x4f2   : > { %v989_v1 = vpop.f32.mrb[7].mxu0 }
 0x501   : > { %v640_v2 = vpop.permute.xlu0 %639  ;;  %v693_v3 = vpop.permute.xlu1 %692 }
 0x502   : > { %993 = vmatmul.mubr.msk.bf16.vlgmr.msra.gmra.mrb[4].mxu1 %vm581_vm5, %v640_v2  ;;  %999 = vmatmul.mubr.msk.bf16.vlgmr.msra.gmra.mrb[8].mxu0 %vm581_vm5, %v693_v3 }
 0x503   : > { %1006 = vmatprep.mubr.msk.bf16.mxu1 %vm1232_vm0, %v1231_v0  ;;  %1003 = vmatpush3.bf16.msra.mxu1 %v1083_v4 }
 0x504   : > { %1004 = vmatprep.subr.bf16.mxu1 %v1231_v0 }
 0x507   : > { %1005 = vmatpush3.bf16.msra.mxu1 %v1084_v5 }
 0x512   : > { %v745_v20 = vpop.permute.xlu1 %744 }
 0x5d5   : > { %v678_v8 = vpop.f32.mrb[4].mxu1  ;;  %v731_v9 = vpop.f32.mrb[8].mxu0 }
 0x5d6   : > { %v738_v11 = vmul.f32 %v737_v7, %v731_v9  ;;  %v994_v12 = vpop.f32.mrb[5].mxu1  ;;  %v1000_v13 = vpop.f32.mrb[9].mxu0  ;;  %v684_v16 = vmul.f32 %v678_v8, %v1466_v17 }
 0x5d7   : > { %v681_v14 = vpop.f32.mrb[6].mxu1  ;;  %v734_v15 = vpop.f32.mrb[10].mxu0 }
 0x5d8   : > { %v739_v18 = vadd.f32 %v738_v11, %v630_v10  ;;  %v995_v0 = vpop.f32.mrb[7].mxu1  ;;  %v1001_v19 = vpop.f32.mrb[11].mxu0 }
 0x5da   : > { %v740_v21 = vadd.f32 %v739_v18, %v684_v16 }
 0x5dc   : > { %v747_v22 = vmul.f32 %v745_v20, %v740_v21 }
 0x5de   : > { %v748_v23 = vpack.c.bf16 %v747_v22, %v747_v22 }
 0x5e0   : > { %1007 = vmatmul.mubr.msk.bf16.vlgmr.msra.gmra.mrb[8].mxu1 %vm405_vm1, %v748_v23 }
 0x6b3   : > { %v809_v17 = vpop.f32.mrb[8].mxu1 }
 0x6b4   : > { %v810_v25 = vadd.f32 %v945_v24, %v809_v17  ;;  %v1008_v26 = vpop.f32.mrb[9].mxu1 }
 0x6b5   : > { %v812_v27 = vpop.f32.mrb[10].mxu1 }
 0x6b6   : > { %v1009_v28 = vpop.f32.mrb[11].mxu1  ;;  %815 = vst.msk [vmem:[%s375_s26] sm:$0xff] %vm405_vm1, %v810_v25 }
 0x6b7   : > { %1168 = shalt.err (!%p1165_p9)
}
 0x6b8   : > { %s1169_s25 = scalar_lea.hbm %s1514_s14, 128  ;;  %s1173_s15 = scalar_lea.hbm %s1568_s9, 256 }
 0x6b9   : > { %p1170_p2 = scmp.ne.s32.totalorder %s1514_s14, %s1169_s25  ;;  %p1174_p1 = scmp.lt.u32.totalorder %s1514_s14, %s1568_s9 }
 0x6ba   : > { %p1175_p11 = scmp.lt.u32.totalorder %s1173_s15, %s1169_s25  ;;  %p1177_p6 = scmp.lt.u32.totalorder %s1169_s25, %s1514_s14 }
 0x6bb   : > { %p1171_p5 = pnand %p1170_p2, %p1381_p12 }
 0x6bc   : > { %p1176_p4 = por %p1175_p11, %p1174_p1 }
 0x6bd   : > { %p1172_p0 = pneg %p1171_p5 }
 0x6be   : > { %p1178_p8 = por %p1177_p6, %p1176_p4 }
 0x6c0   : > { %p1179_p10 = pnand %p1178_p8, %p1172_p0 }
 0x6c2   : > { %1182 = shalt.err (!%p1179_p10)
}
 0x6c3   : > { %1016 = dma.vmem_to_hbm [thread:$0]  (%p1381_p12), %s1516_s22, 128, %s1514_s14, %s817_s13  }
 0x6c4 PF: > { %s1588_s23 = sld [smem:[#allocation11_spill]]  ;;  %s842_s24 = sand.u32 1, %s1213_s30  }
 0x6c5   : > { %p1590_p3 = scmp.ge.s32.totalorder %s1225_s12, 2  ;;  %s843_s19 = scalar_lea.sflag [#allocation4], %s842_s24 }
 0x6ca   : > { %p1589_p13 = scmp.ne.s32.totalorder %s1588_s23, 0 }
 0x6cc   : > { %p1027_p7 = pnand %p1590_p3, %p1589_p13 }
 0x6ce   : > { %1208 = dma.done.wait (!%p1027_p7), %s843_s19, 128  }
 0x6cf   : > { %1210 = vsyncadd (!%p1027_p7), %s843_s19, 4294967168  ;;  %s1591_s12 = sld [smem:[#allocation12_spill]]  ;;  %s1592_s30 = smov %s1217_s10 }
 0x6d0   : > { %s1593_s10 = smov %s1221_s11  ;;  %s1594_s11 = smov %s1377_s28 }
 0x6d5   : > { %p23_p9 = scmp.ge.s32.totalorder %s1591_s12, 4  }
 0x6d7   :  { %25 = sbr.rel (!%p23_p9) target bundleno = 6 (0x6), region = 108 }
 0x6de   :  { %848 = vsyncpa [#allocation3], 1 }
 0x6df   :  { %850 = vsyncpa [#allocation3 + $0x1], 1 }
 0x6e0   :  { %851 = vsyncpa [#allocation6], 1 }
 0x6e1   :  { %852 = vsyncpa [#allocation4], 1 }
 0x6e2   :  { %854 = vsyncpa [#allocation4 + $0x1], 1 }

</bundles_post_ra>
